<compile_context>
chip_gen: v5e
topology: v5e:2x2
jax: 0.10.0
libtpu: 0.0.40
codegen_flags: <defaults>
</compile_context>

<pallas_src>
import functools

import jax
import jax.numpy as jnp
from jax.experimental import pallas as pl
from jax.experimental.pallas import tpu as pltpu

LN_EPS = 1e-5


def _layernorm(h, gamma=None, beta=None, eps=LN_EPS):
    mu = jnp.mean(h, axis=-1, keepdims=True)
    var = jnp.mean((h - mu) ** 2, axis=-1, keepdims=True)
    hn = (h - mu) * jax.lax.rsqrt(var + eps)
    if gamma is not None:
        hn = hn * gamma + beta
    return hn


def _floor_div(idx_i32, q):
    # Integer floor-division by a positive Python-int constant, done on the VPU
    # via float multiply + floor (no vector integer divide on TPU). Exact for
    # the small index ranges used here (the +0.5 keeps floor away from edges).
    inv = 1.0 / float(q)
    return jnp.floor((idx_i32.astype(jnp.float32) + 0.5) * inv).astype(jnp.int32)


# ---------------------------------------------------------------------------
# Fused kernel:
#   hypernet (Linear -> LN(affine) -> ReLU) x2 -> Linear  ==> hypo_params
#   then per-batch BatchLinear (x @ W^T + b) -> LayerNorm(no affine) -> ReLU
# ---------------------------------------------------------------------------
def _fused_hyperlayer_kernel(hyper_ref, x_ref,
                             w0_ref, b0_ref, g0_ref, be0_ref,
                             w1_ref, b1_ref, g1_ref, be1_ref,
                             w2w_ref, b2w_ref, w2b_ref, b2b_ref,
                             o_ref,
                             *, B, N, in_ch, out_ch):
    f32 = jnp.float32
    iw = in_ch * out_ch

    # ---- hypernetwork (FCBlock, 1 hidden layer, outermost_linear=True) ----
    h = jnp.dot(hyper_ref[...], w0_ref[...], preferred_element_type=f32) + b0_ref[...]
    h = jnp.maximum(_layernorm(h, g0_ref[...], be0_ref[...]), 0.0)
    h = jnp.dot(h, w1_ref[...], preferred_element_type=f32) + b1_ref[...]
    h = jnp.maximum(_layernorm(h, g1_ref[...], be1_ref[...]), 0.0)

    # Split head: predicted flat weights (B, in*out) and predicted biases (B, out).
    hp_w = jnp.dot(h, w2w_ref[...], preferred_element_type=f32) + b2w_ref[...]
    hp_b = jnp.dot(h, w2b_ref[...], preferred_element_type=f32) + b2b_ref[...]

    # ---- flat predicted weights -> stacked W^T, with NO scatter / reshape ----
    # torch layout: hp_w[b, o*in_ch + i] == W_b[o, i]  (weights.view(out_ch, in_ch))
    # Selection masks (hoisted, loop-invariant):
    #   D[i, c] = 1  iff  (c mod in_ch) == i        shape (in_ch, iw)
    #   F[c, o] = 1  iff  (c div in_ch) == o        shape (iw, out_ch)
    # so that  ((hp_w[b] broadcast over rows) * D) @ F  ==  W_b^T  exactly
    # (each output element picks exactly one flat weight; the matmul adds zeros).
    c_d = jax.lax.broadcasted_iota(jnp.int32, (in_ch, iw), 1)
    i_d = jax.lax.broadcasted_iota(jnp.int32, (in_ch, iw), 0)
    c_mod = c_d - _floor_div(c_d, in_ch) * in_ch
    D = (c_mod == i_d).astype(f32)

    c_f = jax.lax.broadcasted_iota(jnp.int32, (iw, out_ch), 0)
    o_f = jax.lax.broadcasted_iota(jnp.int32, (iw, out_ch), 1)
    F = (_floor_div(c_f, in_ch) == o_f).astype(f32)

    vd = jnp.concatenate(
        [jnp.broadcast_to(hp_w[b:b + 1, :], (in_ch, iw)) * D for b in range(B)],
        axis=0)                                               # (B*in_ch, iw)
    wt_all = jnp.dot(vd, F, preferred_element_type=f32)       # (B*in_ch, out_ch)

    # ---- predicted layer: BatchLinear -> LayerNorm([out_ch], no affine) -> ReLU
    ys = []
    for b in range(B):                    # B is tiny; static unroll is fine here
        wt_b = wt_all[b * in_ch:(b + 1) * in_ch, :]           # W_b^T (in_ch, out_ch)
        y_b = jnp.dot(x_ref[b], wt_b, preferred_element_type=f32) + hp_b[b:b + 1, :]
        ys.append(y_b)
    y = jnp.concatenate(ys, axis=0)                           # (B*N, out_ch)
    y = _layernorm(y)                                         # eps=1e-5, no affine
    o_ref[...] = jnp.maximum(y, 0.0).astype(o_ref.dtype)      # single store


@functools.partial(jax.jit, static_argnums=(3, 4))
def hyper_layer_apply(hyper_input, x, params, in_ch, out_ch):
    (w0, b0, g0, be0, w1, b1, g1, be1, w2, b2) = params
    B, N, _ = x.shape
    iw = in_ch * out_ch

    # Split the hypernet head (weight head / bias head) outside the kernel; this
    # keeps hp_w an exact multiple of the 128-lane tile. Stored parameter layout
    # (and the reference below) stay untouched.
    w2w, w2b = w2[:, :iw], w2[:, iw:iw + out_ch]
    b2w, b2b = b2[:, :iw], b2[:, iw:iw + out_ch]

    args = (hyper_input, x, w0, b0, g0, be0, w1, b1, g1, be1, w2w, b2w, w2b, b2b)

    hidden = w0.shape[1]
    hyper_in_ch = hyper_input.shape[1]
    flops = (2 * B * (hyper_in_ch * hidden + hidden * hidden + hidden * (iw + out_ch))
             + 2 * B * in_ch * iw * out_ch          # mask-matmul "reshape"
             + 2 * B * N * in_ch * out_ch)          # BatchLinear
    transcendentals = 2 * B + B * N                 # one rsqrt per LayerNorm row
    bytes_accessed = (sum(int(a.size) * a.dtype.itemsize for a in args)
                      + B * N * out_ch * 4)

    kernel = functools.partial(_fused_hyperlayer_kernel,
                               B=B, N=N, in_ch=in_ch, out_ch=out_ch)
    vmem = pl.BlockSpec(memory_space=pltpu.MemorySpace.VMEM)

    out = pl.pallas_call(
        kernel,
        out_shape=jax.ShapeDtypeStruct((B * N, out_ch), jnp.float32),
        in_specs=[vmem] * len(args),
        out_specs=vmem,
        cost_estimate=pl.CostEstimate(
            flops=flops, transcendentals=transcendentals,
            bytes_accessed=bytes_accessed),
    )(*args)
    return out.reshape(B, N, out_ch)


# ---------------------------------------------------------------------------
# Deterministic parameter init (shapes from HyperLinear.__init__ / FCBlock)
# ---------------------------------------------------------------------------
def init_hypernet_params(key, hyper_in_ch, hyper_hidden_ch, n_out_params):
    ks = jax.random.split(key, 3)

    def kaiming(k, fan_in, shape):
        # kaiming_normal_(a=0, nonlinearity='relu', mode='fan_in')
        return jax.random.normal(k, shape, jnp.float32) * jnp.sqrt(2.0 / fan_in)

    w0 = kaiming(ks[0], hyper_in_ch, (hyper_in_ch, hyper_hidden_ch))
    b0 = jnp.zeros((1, hyper_hidden_ch), jnp.float32)
    g0 = jnp.ones((1, hyper_hidden_ch), jnp.float32)
    be0 = jnp.zeros((1, hyper_hidden_ch), jnp.float32)

    w1 = kaiming(ks[1], hyper_hidden_ch, (hyper_hidden_ch, hyper_hidden_ch))
    b1 = jnp.zeros((1, hyper_hidden_ch), jnp.float32)
    g1 = jnp.ones((1, hyper_hidden_ch), jnp.float32)
    be1 = jnp.zeros((1, hyper_hidden_ch), jnp.float32)

    # last layer: kaiming then *0.1 (last_hyper_layer_init)
    w2 = kaiming(ks[2], hyper_hidden_ch, (hyper_hidden_ch, n_out_params)) * 0.1
    b2 = jnp.zeros((1, n_out_params), jnp.float32)

    return (w0, b0, g0, be0, w1, b1, g1, be1, w2, b2)


# ---------------------------------------------------------------------------
# Pure-JAX reference for validation (uses the original, unsplit head layout)
# ---------------------------------------------------------------------------
def reference(hyper_input, x, params, in_ch, out_ch):
    (w0, b0, g0, be0, w1, b1, g1, be1, w2, b2) = params
    h = hyper_input @ w0 + b0
    h = jnp.maximum(_layernorm(h, g0, be0), 0.0)
    h = h @ w1 + b1
    h = jnp.maximum(_layernorm(h, g1, be1), 0.0)
    hp = h @ w2 + b2
    B = hyper_input.shape[0]
    W = hp[..., :in_ch * out_ch].reshape(B, out_ch, in_ch)
    b = hp[..., in_ch * out_ch:in_ch * out_ch + out_ch].reshape(B, 1, out_ch)
    y = jnp.einsum("bni,boi->bno", x, W) + b
    y = _layernorm(y)
    return jnp.maximum(y, 0.0)


if __name__ == "__main__":
    # Small shapes consistent with the module
    B = 2
    N = 8                        # number of points fed to the predicted layer
    in_ch, out_ch = 16, 16
    hyper_in_ch = 32
    hyper_num_hidden_layers = 1  # unrolled in the fused kernel
    hyper_hidden_ch = 64
    n_out_params = in_ch * out_ch + out_ch

    key = jax.random.PRNGKey(0)
    k_inp, k_x, k_par = jax.random.split(key, 3)
    hyper_input = jax.random.normal(k_inp, (B, hyper_in_ch), jnp.float32)
    x = jax.random.normal(k_x, (B, N, in_ch), jnp.float32)
    params = init_hypernet_params(k_par, hyper_in_ch, hyper_hidden_ch, n_out_params)

    out = hyper_layer_apply(hyper_input, x, params, in_ch, out_ch)
    out = jax.block_until_ready(out)

    ref = reference(hyper_input, x, params, in_ch, out_ch)
    assert out.shape == (B, N, out_ch)
    assert jnp.allclose(out, ref, atol=1e-4, rtol=1e-4), "mismatch vs reference"

    print("KERNEL_OK")
</pallas_src>

<mosaic_0001>
module attributes {stable_mosaic.version = 11 : i64} {
  func.func @_fused_hyperlayer_kernel(%arg0: memref<2x32xf32, #tpu.memory_space<vmem>>, %arg1: memref<2x8x16xf32, #tpu.memory_space<vmem>>, %arg2: memref<32x64xf32, #tpu.memory_space<vmem>>, %arg3: memref<1x64xf32, #tpu.memory_space<vmem>>, %arg4: memref<1x64xf32, #tpu.memory_space<vmem>>, %arg5: memref<1x64xf32, #tpu.memory_space<vmem>>, %arg6: memref<64x64xf32, #tpu.memory_space<vmem>>, %arg7: memref<1x64xf32, #tpu.memory_space<vmem>>, %arg8: memref<1x64xf32, #tpu.memory_space<vmem>>, %arg9: memref<1x64xf32, #tpu.memory_space<vmem>>, %arg10: memref<64x256xf32, #tpu.memory_space<vmem>>, %arg11: memref<1x256xf32, #tpu.memory_space<vmem>>, %arg12: memref<64x16xf32, #tpu.memory_space<vmem>>, %arg13: memref<1x16xf32, #tpu.memory_space<vmem>>, %arg14: memref<16x16xf32, #tpu.memory_space<vmem>>) attributes {dimension_semantics = [], scalar_prefetch = 0 : i64, scratch_operands = 0 : i64, tpu.core_type = #tpu.core_type<tc>} {
    %c0 = arith.constant 0 : index
    %c0_0 = arith.constant 0 : index
    %0 = vector.load %arg0[%c0, %c0_0] : memref<2x32xf32, #tpu.memory_space<vmem>>, vector<2x32xf32>
    %c0_1 = arith.constant 0 : index
    %c0_2 = arith.constant 0 : index
    %1 = vector.load %arg2[%c0_1, %c0_2] : memref<32x64xf32, #tpu.memory_space<vmem>>, vector<32x64xf32>
    %cst = arith.constant dense<0.000000e+00> : vector<2x64xf32>
    %2 = tpu.matmul %0, %1, %cst {dimension_numbers = #tpu.dot_dimension_numbers<[1], [0], [0], [1], [0, 0, 1, 1], [], []>} : vector<2x32xf32>, vector<32x64xf32>, vector<2x64xf32> -> vector<2x64xf32>
    %c0_3 = arith.constant 0 : index
    %c0_4 = arith.constant 0 : index
    %3 = vector.load %arg3[%c0_3, %c0_4] : memref<1x64xf32, #tpu.memory_space<vmem>>, vector<1x64xf32>
    %4 = vector.broadcast %3 : vector<1x64xf32> to vector<2x64xf32>
    %5 = arith.addf %2, %4 : vector<2x64xf32>
    %c0_5 = arith.constant 0 : index
    %c0_6 = arith.constant 0 : index
    %6 = vector.load %arg4[%c0_5, %c0_6] : memref<1x64xf32, #tpu.memory_space<vmem>>, vector<1x64xf32>
    %c0_7 = arith.constant 0 : index
    %c0_8 = arith.constant 0 : index
    %7 = vector.load %arg5[%c0_7, %c0_8] : memref<1x64xf32, #tpu.memory_space<vmem>>, vector<1x64xf32>
    %cst_9 = arith.constant dense<0.000000e+00> : vector<2xf32>
    %8 = vector.multi_reduction <add>, %5, %cst_9 [1] : vector<2x64xf32> to vector<2xf32>
    %9 = vector.shape_cast %8 : vector<2xf32> to vector<2x1xf32>
    %cst_10 = arith.constant 6.400000e+01 : f32
    %10 = vector.broadcast %cst_10 : f32 to vector<2x1xf32>
    %11 = arith.divf %9, %10 : vector<2x1xf32>
    %12 = vector.broadcast %11 : vector<2x1xf32> to vector<2x64xf32>
    %13 = arith.subf %5, %12 : vector<2x64xf32>
    %14 = arith.mulf %13, %13 : vector<2x64xf32>
    %cst_11 = arith.constant dense<0.000000e+00> : vector<2xf32>
    %15 = vector.multi_reduction <add>, %14, %cst_11 [1] : vector<2x64xf32> to vector<2xf32>
    %16 = vector.shape_cast %15 : vector<2xf32> to vector<2x1xf32>
    %cst_12 = arith.constant 6.400000e+01 : f32
    %17 = vector.broadcast %cst_12 : f32 to vector<2x1xf32>
    %18 = arith.divf %16, %17 : vector<2x1xf32>
    %19 = vector.broadcast %11 : vector<2x1xf32> to vector<2x64xf32>
    %20 = arith.subf %5, %19 : vector<2x64xf32>
    %cst_13 = arith.constant 9.99999974E-6 : f32
    %21 = vector.broadcast %cst_13 : f32 to vector<2x1xf32>
    %22 = arith.addf %18, %21 : vector<2x1xf32>
    %23 = math.rsqrt %22 : vector<2x1xf32>
    %24 = vector.broadcast %23 : vector<2x1xf32> to vector<2x64xf32>
    %25 = arith.mulf %20, %24 : vector<2x64xf32>
    %26 = vector.broadcast %6 : vector<1x64xf32> to vector<2x64xf32>
    %27 = arith.mulf %25, %26 : vector<2x64xf32>
    %28 = vector.broadcast %7 : vector<1x64xf32> to vector<2x64xf32>
    %29 = arith.addf %27, %28 : vector<2x64xf32>
    %cst_14 = arith.constant 0.000000e+00 : f32
    %30 = vector.broadcast %cst_14 : f32 to vector<2x64xf32>
    %31 = arith.maximumf %29, %30 : vector<2x64xf32>
    %c0_15 = arith.constant 0 : index
    %c0_16 = arith.constant 0 : index
    %32 = vector.load %arg6[%c0_15, %c0_16] : memref<64x64xf32, #tpu.memory_space<vmem>>, vector<64x64xf32>
    %cst_17 = arith.constant dense<0.000000e+00> : vector<2x64xf32>
    %33 = tpu.matmul %31, %32, %cst_17 {dimension_numbers = #tpu.dot_dimension_numbers<[1], [0], [0], [1], [0, 0, 1, 1], [], []>} : vector<2x64xf32>, vector<64x64xf32>, vector<2x64xf32> -> vector<2x64xf32>
    %c0_18 = arith.constant 0 : index
    %c0_19 = arith.constant 0 : index
    %34 = vector.load %arg7[%c0_18, %c0_19] : memref<1x64xf32, #tpu.memory_space<vmem>>, vector<1x64xf32>
    %35 = vector.broadcast %34 : vector<1x64xf32> to vector<2x64xf32>
    %36 = arith.addf %33, %35 : vector<2x64xf32>
    %c0_20 = arith.constant 0 : index
    %c0_21 = arith.constant 0 : index
    %37 = vector.load %arg8[%c0_20, %c0_21] : memref<1x64xf32, #tpu.memory_space<vmem>>, vector<1x64xf32>
    %c0_22 = arith.constant 0 : index
    %c0_23 = arith.constant 0 : index
    %38 = vector.load %arg9[%c0_22, %c0_23] : memref<1x64xf32, #tpu.memory_space<vmem>>, vector<1x64xf32>
    %cst_24 = arith.constant dense<0.000000e+00> : vector<2xf32>
    %39 = vector.multi_reduction <add>, %36, %cst_24 [1] : vector<2x64xf32> to vector<2xf32>
    %40 = vector.shape_cast %39 : vector<2xf32> to vector<2x1xf32>
    %cst_25 = arith.constant 6.400000e+01 : f32
    %41 = vector.broadcast %cst_25 : f32 to vector<2x1xf32>
    %42 = arith.divf %40, %41 : vector<2x1xf32>
    %43 = vector.broadcast %42 : vector<2x1xf32> to vector<2x64xf32>
    %44 = arith.subf %36, %43 : vector<2x64xf32>
    %45 = arith.mulf %44, %44 : vector<2x64xf32>
    %cst_26 = arith.constant dense<0.000000e+00> : vector<2xf32>
    %46 = vector.multi_reduction <add>, %45, %cst_26 [1] : vector<2x64xf32> to vector<2xf32>
    %47 = vector.shape_cast %46 : vector<2xf32> to vector<2x1xf32>
    %cst_27 = arith.constant 6.400000e+01 : f32
    %48 = vector.broadcast %cst_27 : f32 to vector<2x1xf32>
    %49 = arith.divf %47, %48 : vector<2x1xf32>
    %50 = vector.broadcast %42 : vector<2x1xf32> to vector<2x64xf32>
    %51 = arith.subf %36, %50 : vector<2x64xf32>
    %cst_28 = arith.constant 9.99999974E-6 : f32
    %52 = vector.broadcast %cst_28 : f32 to vector<2x1xf32>
    %53 = arith.addf %49, %52 : vector<2x1xf32>
    %54 = math.rsqrt %53 : vector<2x1xf32>
    %55 = vector.broadcast %54 : vector<2x1xf32> to vector<2x64xf32>
    %56 = arith.mulf %51, %55 : vector<2x64xf32>
    %57 = vector.broadcast %37 : vector<1x64xf32> to vector<2x64xf32>
    %58 = arith.mulf %56, %57 : vector<2x64xf32>
    %59 = vector.broadcast %38 : vector<1x64xf32> to vector<2x64xf32>
    %60 = arith.addf %58, %59 : vector<2x64xf32>
    %cst_29 = arith.constant 0.000000e+00 : f32
    %61 = vector.broadcast %cst_29 : f32 to vector<2x64xf32>
    %62 = arith.maximumf %60, %61 : vector<2x64xf32>
    %c0_30 = arith.constant 0 : index
    %c0_31 = arith.constant 0 : index
    %63 = vector.load %arg10[%c0_30, %c0_31] : memref<64x256xf32, #tpu.memory_space<vmem>>, vector<64x256xf32>
    %cst_32 = arith.constant dense<0.000000e+00> : vector<2x256xf32>
    %64 = tpu.matmul %62, %63, %cst_32 {dimension_numbers = #tpu.dot_dimension_numbers<[1], [0], [0], [1], [0, 0, 1, 1], [], []>} : vector<2x64xf32>, vector<64x256xf32>, vector<2x256xf32> -> vector<2x256xf32>
    %c0_33 = arith.constant 0 : index
    %c0_34 = arith.constant 0 : index
    %65 = vector.load %arg11[%c0_33, %c0_34] : memref<1x256xf32, #tpu.memory_space<vmem>>, vector<1x256xf32>
    %66 = vector.broadcast %65 : vector<1x256xf32> to vector<2x256xf32>
    %67 = arith.addf %64, %66 : vector<2x256xf32>
    %c0_35 = arith.constant 0 : index
    %c0_36 = arith.constant 0 : index
    %68 = vector.load %arg12[%c0_35, %c0_36] : memref<64x16xf32, #tpu.memory_space<vmem>>, vector<64x16xf32>
    %cst_37 = arith.constant dense<0.000000e+00> : vector<2x16xf32>
    %69 = tpu.matmul %62, %68, %cst_37 {dimension_numbers = #tpu.dot_dimension_numbers<[1], [0], [0], [1], [0, 0, 1, 1], [], []>} : vector<2x64xf32>, vector<64x16xf32>, vector<2x16xf32> -> vector<2x16xf32>
    %c0_38 = arith.constant 0 : index
    %c0_39 = arith.constant 0 : index
    %70 = vector.load %arg13[%c0_38, %c0_39] : memref<1x16xf32, #tpu.memory_space<vmem>>, vector<1x16xf32>
    %71 = vector.broadcast %70 : vector<1x16xf32> to vector<2x16xf32>
    %72 = arith.addf %69, %71 : vector<2x16xf32>
    %73 = tpu.iota {dimensions = array<i32: 1>} : vector<16x256xi32>
    %74 = tpu.iota {dimensions = array<i32: 0>} : vector<16x256xi32>
    %75 = arith.sitofp %73 : vector<16x256xi32> to vector<16x256xf32>
    %cst_40 = arith.constant 5.000000e-01 : f32
    %76 = vector.broadcast %cst_40 : f32 to vector<16x256xf32>
    %77 = arith.addf %75, %76 : vector<16x256xf32>
    %cst_41 = arith.constant 6.250000e-02 : f32
    %78 = vector.broadcast %cst_41 : f32 to vector<16x256xf32>
    %79 = arith.mulf %77, %78 : vector<16x256xf32>
    %80 = math.floor %79 : vector<16x256xf32>
    %81 = arith.fptosi %80 : vector<16x256xf32> to vector<16x256xi32>
    %c16_i32 = arith.constant 16 : i32
    %82 = vector.broadcast %c16_i32 : i32 to vector<16x256xi32>
    %83 = arith.muli %81, %82 : vector<16x256xi32>
    %84 = arith.subi %73, %83 : vector<16x256xi32>
    %85 = arith.cmpi eq, %84, %74 : vector<16x256xi32>
    %86 = arith.extui %85 : vector<16x256xi1> to vector<16x256xi32>
    %87 = arith.sitofp %86 : vector<16x256xi32> to vector<16x256xf32>
    %88 = tpu.iota {dimensions = array<i32: 0>} : vector<256x16xi32>
    %89 = tpu.iota {dimensions = array<i32: 1>} : vector<256x16xi32>
    %90 = arith.sitofp %88 : vector<256x16xi32> to vector<256x16xf32>
    %cst_42 = arith.constant 5.000000e-01 : f32
    %91 = vector.broadcast %cst_42 : f32 to vector<256x16xf32>
    %92 = arith.addf %90, %91 : vector<256x16xf32>
    %cst_43 = arith.constant 6.250000e-02 : f32
    %93 = vector.broadcast %cst_43 : f32 to vector<256x16xf32>
    %94 = arith.mulf %92, %93 : vector<256x16xf32>
    %95 = math.floor %94 : vector<256x16xf32>
    %96 = arith.fptosi %95 : vector<256x16xf32> to vector<256x16xi32>
    %97 = arith.cmpi eq, %96, %89 : vector<256x16xi32>
    %98 = arith.extui %97 : vector<256x16xi1> to vector<256x16xi32>
    %99 = arith.sitofp %98 : vector<256x16xi32> to vector<256x16xf32>
    %100 = vector.extract_strided_slice %67 {offsets = [0, 0], sizes = [1, 256], strides = [1, 1]} : vector<2x256xf32> to vector<1x256xf32>
    %101 = vector.shape_cast %100 : vector<1x256xf32> to vector<1x256xf32>
    %102 = vector.broadcast %101 : vector<1x256xf32> to vector<16x256xf32>
    %103 = arith.mulf %102, %87 : vector<16x256xf32>
    %104 = vector.extract_strided_slice %67 {offsets = [1, 0], sizes = [1, 256], strides = [1, 1]} : vector<2x256xf32> to vector<1x256xf32>
    %105 = vector.shape_cast %104 : vector<1x256xf32> to vector<1x256xf32>
    %106 = vector.broadcast %105 : vector<1x256xf32> to vector<16x256xf32>
    %107 = arith.mulf %106, %87 : vector<16x256xf32>
    %108 = tpu.concatenate %103, %107 in 0 : vector<16x256xf32>, vector<16x256xf32> -> vector<32x256xf32>
    %cst_44 = arith.constant dense<0.000000e+00> : vector<32x16xf32>
    %109 = tpu.matmul %108, %99, %cst_44 {dimension_numbers = #tpu.dot_dimension_numbers<[1], [0], [0], [1], [0, 0, 1, 1], [], []>} : vector<32x256xf32>, vector<256x16xf32>, vector<32x16xf32> -> vector<32x16xf32>
    %110 = vector.extract_strided_slice %109 {offsets = [0, 0], sizes = [16, 16], strides = [1, 1]} : vector<32x16xf32> to vector<16x16xf32>
    %c0_45 = arith.constant 0 : index
    %c0_46 = arith.constant 0 : index
    %c0_47 = arith.constant 0 : index
    %111 = vector.load %arg1[%c0_45, %c0_46, %c0_47] : memref<2x8x16xf32, #tpu.memory_space<vmem>>, vector<1x8x16xf32>
    %112 = vector.shape_cast %111 : vector<1x8x16xf32> to vector<8x16xf32>
    %cst_48 = arith.constant dense<0.000000e+00> : vector<8x16xf32>
    %113 = tpu.matmul %112, %110, %cst_48 {dimension_numbers = #tpu.dot_dimension_numbers<[1], [0], [0], [1], [0, 0, 1, 1], [], []>} : vector<8x16xf32>, vector<16x16xf32>, vector<8x16xf32> -> vector<8x16xf32>
    %114 = vector.extract_strided_slice %72 {offsets = [0, 0], sizes = [1, 16], strides = [1, 1]} : vector<2x16xf32> to vector<1x16xf32>
    %115 = vector.broadcast %114 : vector<1x16xf32> to vector<8x16xf32>
    %116 = arith.addf %113, %115 : vector<8x16xf32>
    %117 = vector.extract_strided_slice %109 {offsets = [16, 0], sizes = [16, 16], strides = [1, 1]} : vector<32x16xf32> to vector<16x16xf32>
    %c1 = arith.constant 1 : index
    %c0_49 = arith.constant 0 : index
    %c0_50 = arith.constant 0 : index
    %118 = vector.load %arg1[%c1, %c0_49, %c0_50] : memref<2x8x16xf32, #tpu.memory_space<vmem>>, vector<1x8x16xf32>
    %119 = vector.shape_cast %118 : vector<1x8x16xf32> to vector<8x16xf32>
    %cst_51 = arith.constant dense<0.000000e+00> : vector<8x16xf32>
    %120 = tpu.matmul %119, %117, %cst_51 {dimension_numbers = #tpu.dot_dimension_numbers<[1], [0], [0], [1], [0, 0, 1, 1], [], []>} : vector<8x16xf32>, vector<16x16xf32>, vector<8x16xf32> -> vector<8x16xf32>
    %121 = vector.extract_strided_slice %72 {offsets = [1, 0], sizes = [1, 16], strides = [1, 1]} : vector<2x16xf32> to vector<1x16xf32>
    %122 = vector.broadcast %121 : vector<1x16xf32> to vector<8x16xf32>
    %123 = arith.addf %120, %122 : vector<8x16xf32>
    %124 = tpu.concatenate %116, %123 in 0 : vector<8x16xf32>, vector<8x16xf32> -> vector<16x16xf32>
    %cst_52 = arith.constant dense<0.000000e+00> : vector<16xf32>
    %125 = vector.multi_reduction <add>, %124, %cst_52 [1] : vector<16x16xf32> to vector<16xf32>
    %126 = vector.shape_cast %125 : vector<16xf32> to vector<16x1xf32>
    %cst_53 = arith.constant 1.600000e+01 : f32
    %127 = vector.broadcast %cst_53 : f32 to vector<16x1xf32>
    %128 = arith.divf %126, %127 : vector<16x1xf32>
    %129 = vector.broadcast %128 : vector<16x1xf32> to vector<16x16xf32>
    %130 = arith.subf %124, %129 : vector<16x16xf32>
    %131 = arith.mulf %130, %130 : vector<16x16xf32>
    %cst_54 = arith.constant dense<0.000000e+00> : vector<16xf32>
    %132 = vector.multi_reduction <add>, %131, %cst_54 [1] : vector<16x16xf32> to vector<16xf32>
    %133 = vector.shape_cast %132 : vector<16xf32> to vector<16x1xf32>
    %cst_55 = arith.constant 1.600000e+01 : f32
    %134 = vector.broadcast %cst_55 : f32 to vector<16x1xf32>
    %135 = arith.divf %133, %134 : vector<16x1xf32>
    %136 = vector.broadcast %128 : vector<16x1xf32> to vector<16x16xf32>
    %137 = arith.subf %124, %136 : vector<16x16xf32>
    %cst_56 = arith.constant 9.99999974E-6 : f32
    %138 = vector.broadcast %cst_56 : f32 to vector<16x1xf32>
    %139 = arith.addf %135, %138 : vector<16x1xf32>
    %140 = math.rsqrt %139 : vector<16x1xf32>
    %141 = vector.broadcast %140 : vector<16x1xf32> to vector<16x16xf32>
    %142 = arith.mulf %137, %141 : vector<16x16xf32>
    %cst_57 = arith.constant 0.000000e+00 : f32
    %143 = vector.broadcast %cst_57 : f32 to vector<16x16xf32>
    %144 = arith.maximumf %142, %143 : vector<16x16xf32>
    %c0_58 = arith.constant 0 : index
    %c0_59 = arith.constant 0 : index
    %145 = vector.load %arg14[%c0_58, %c0_59] : memref<16x16xf32, #tpu.memory_space<vmem>>, vector<16x16xf32>
    tpu.vector_store %arg14[%c0_58, %c0_59], %144 {strides = array<i32>} : memref<16x16xf32, #tpu.memory_space<vmem>>, vector<16x16xf32>,
    return
  }
}

</mosaic_0001>

<bundles_post_ra>
// kernel: hyper_layer_apply.1
= control target key start
LH: loop header
LB: loop body
LE: loop exit
PB: predicated region body
PF: predicated region fallthrough
CT: control target
= control target key end

     0   :  { %s1374_s0 = inlined_call_operand.vmem [shape: f32[2,32], index: 0, kind: input, shape index: {}]   ;;  %s1375_s1 = inlined_call_operand.vmem [shape: f32[2,8,16], index: 1, kind: input, shape index: {}]   ;;  %s1376_s2 = inlined_call_operand.vmem [shape: f32[32,64], index: 2, kind: input, shape index: {}]   ;;  %s1377_s3 = inlined_call_operand.vmem [shape: f32[1,64], index: 3, kind: input, shape index: {}]   ;;  %s1378_s4 = inlined_call_operand.vmem [shape: f32[1,64], index: 4, kind: input, shape index: {}]   ;;  %s1379_s5 = inlined_call_operand.vmem [shape: f32[1,64], index: 5, kind: input, shape index: {}]   ;;  %s1380_s6 = inlined_call_operand.vmem [shape: f32[64,64], index: 6, kind: input, shape index: {}]   ;;  %s1381_s7 = inlined_call_operand.vmem [shape: f32[1,64], index: 7, kind: input, shape index: {}]   ;;  %s1382_s8 = inlined_call_operand.vmem [shape: f32[1,64], index: 8, kind: input, shape index: {}]   ;;  %s1383_s9 = inlined_call_operand.vmem [shape: f32[1,64], index: 9, kind: input, shape index: {}]   ;;  %s1384_s10 = inlined_call_operand.vmem [shape: f32[64,256], index: 10, kind: input, shape index: {}]   ;;  %s1385_s11 = inlined_call_operand.vmem [shape: f32[1,256], index: 11, kind: input, shape index: {}]   ;;  %s1386_s12 = inlined_call_operand.vmem [shape: f32[64,16], index: 12, kind: input, shape index: {}]   ;;  %s1387_s13 = inlined_call_operand.vmem [shape: f32[1,16], index: 13, kind: input, shape index: {}]   ;;  %s1388_s14 = inlined_call_operand.hbm [shape: f32[16,16], index: 14, kind: output, shape index: {}]  }
   0x1   :  { %v52_v0 = vld [vmem:[%s1376_s2 + $0x18] sm:$0xff]  ;;  %v51_v1 = vld [vmem:[%s1376_s2 + $0x10] sm:$0xff]  ;;  %v50_v2 = vld [vmem:[%s1376_s2 + $0x8] sm:$0xff] }
   0x2   :  { %73 = vmatpush.msra.mxu0 %v52_v0  ;;  %v49_v3 = vld [vmem:[%s1376_s2] sm:$0xff] }
   0x4   :  { %74 = vmatpush.msra.mxu0 %v51_v1 }
   0x5   :  { %19 = vsyncpa [#allocation3], 0  ;;  %v48_v4 = vld [vmem:[%s1374_s0] sm:$0x3]  ;;  %vm57_vm0 = vcmask 261120   ;;  %vm83_vm1 = vcmask 517120  }
   0x6   :  { %75 = vmatpush.msra.mxu0 %v50_v2  ;;  %v952_v5 = vld [vmem:[%s1377_s3] ss:$0 sm:$0xff]  ;;  %v997_v9 = vmov 64.0   ;;  %v129_v21 = vld [vmem:[%s1380_s6 + $0x38] sm:$0xff]  ;;  %v128_v22 = vld [vmem:[%s1380_s6 + $0x30] sm:$0xff]  ;;  %vm134_vm6 = vcmask 523264  }
   0x7   :  { %959 = vrcp.f32 %v997_v9  ;;  %146 = vmatpush.msra.mxu3 %v129_v21  ;;  %v127_v23 = vld [vmem:[%s1380_s6 + $0x28] sm:$0xff]  ;;  %v126_v24 = vld [vmem:[%s1380_s6 + $0x20] sm:$0xff]  ;;  %v125_v25 = vld [vmem:[%s1380_s6 + $0x18] sm:$0xff]  ;;  %s789_s16 = sshll.u32 %s1388_s14, 4  ;;  %s1002_s17 = smov 128   ;;  %s790_s16 = int_to_ptr.hbm [resolvable:$true] %s789_s16 }
   0x8   :  { %76 = vmatpush.msra.mxu0 %v49_v3  ;;  %v124_v26 = vld [vmem:[%s1380_s6 + $0x10] sm:$0xff]  ;;  %v123_v27 = vld [vmem:[%s1380_s6 + $0x8] sm:$0xff]  ;;  %v122_v28 = vld [vmem:[%s1380_s6] sm:$0xff]  ;;  %s1003_s18 = smov 8  }
   0x9   :  { %801 = vmatmul.msk.f32.vlgmr.msra.gmra.mxu0 %vm57_vm0, %v48_v4  ;;  %147 = vmatpush.msra.mxu3 %v128_v22  ;;  %v953_v38 = vld [vmem:[%s1378_s4] ss:$0 sm:$0xff]  ;;  %v205_v54 = vld [vmem:[%s1384_s10 + $0x70] sm:$0xff]  ;;  %v206_v58 = vld [vmem:[%s1384_s10 + $0x78] sm:$0xff] }
   0xa   :  { %v954_v41 = vld [vmem:[%s1379_s5] ss:$0 sm:$0xff]  ;;  %224 = vmatpush.msrb.mxu0 %v205_v54  ;;  %v201_v56 = vld [vmem:[%s1384_s10 + $0x50] sm:$0xff]  ;;  %v204_v60 = vld [vmem:[%s1384_s10 + $0x68] sm:$0xff] }
   0xb   :  { %148 = vmatpush.msra.mxu3 %v127_v23  ;;  %v955_v45 = vld [vmem:[%s1381_s7] ss:$0 sm:$0xff]  ;;  %v197_v59 = vld [vmem:[%s1384_s10 + $0x30] sm:$0xff]  ;;  %v202_v62 = vld [vmem:[%s1384_s10 + $0x58] sm:$0xff] }
   0xc   :  { %v203_v55 = vld [vmem:[%s1384_s10 + $0x60] sm:$0xff]  ;;  %v193_v63 = vld [vmem:[%s1384_s10 + $0x10] sm:$0xff]  ;;  %v200_v0 = vld [vmem:[%s1384_s10 + $0x48] sm:$0xff] }
   0xd   :  { %v960_v10 = vpop.eup %959  ;;  %149 = vmatpush.msra.mxu3 %v126_v24  ;;  %225 = vmatpush.msrb.mxu0 %v203_v55  ;;  %v199_v57 = vld [vmem:[%s1384_s10 + $0x40] sm:$0xff]  ;;  %v198_v2 = vld [vmem:[%s1384_s10 + $0x38] sm:$0xff]  ;;  %v196_v4 = vld [vmem:[%s1384_s10 + $0x28] sm:$0xff] }
   0xe   :  { %v88_v11 = vmul.f32 64.0, %v960_v10  ;;  %vm92_vm2 = vweird.f32 %v960_v10  ;;  %v195_v61 = vld [vmem:[%s1384_s10 + $0x20] sm:$0xff]  ;;  %v263_v3 = vld [vmem:[%s1386_s12 + $0x38] sm:$0xff] }
   0xf   :  { %150 = vmatpush.msra.mxu3 %v125_v25  ;;  %226 = vmatpush.msrb.mxu0 %v201_v56  ;;  %v191_v1 = vld [vmem:[%s1384_s10] sm:$0xff] }
  0x10   :  { %v89_v12 = vsub.f32 1.0, %v88_v11  ;;  %v260_v9 = vld [vmem:[%s1386_s12 + $0x20] sm:$0xff]  ;;  %v258_v11 = vld [vmem:[%s1386_s12 + $0x10] sm:$0xff] }
  0x11   :  { %151 = vmatpush.msra.mxu3 %v124_v26  ;;  %227 = vmatpush.msrb.mxu0 %v199_v57 }
  0x12   :  { %v90_v13 = vmul.f32 %v960_v10, %v89_v12 }
  0x13   :  { %152 = vmatpush.msra.mxu3 %v123_v27  ;;  %228 = vmatpush.msrb.mxu0 %v197_v59 }
  0x14   :  { %v91_v14 = vadd.f32 %v960_v10, %v90_v13 }
  0x15   :  { %153 = vmatpush.msra.mxu3 %v122_v28  ;;  %229 = vmatpush.msrb.mxu0 %v195_v61  ;;  %v956_v61 = vld [vmem:[%s1382_s8] ss:$0 sm:$0xff] }
  0x16   :  { %v1098_v15 = vsel %vm92_vm2, %v960_v10, %v91_v14  ;;  %v259_v10 = vld [vmem:[%s1386_s12 + $0x18] sm:$0xff]  ;;  %v257_v14 = vld [vmem:[%s1386_s12 + $0x8] sm:$0xff] }
  0x17   :  { %244 = vmatpush.msrb.mxu3 %v206_v58  ;;  %230 = vmatpush.msrb.mxu0 %v193_v63 }
  0x19   :  { %245 = vmatpush.msrb.mxu3 %v204_v60  ;;  %231 = vmatpush.msrb.mxu0 %v191_v1 }
  0x1b   :  { %246 = vmatpush.msrb.mxu3 %v202_v62  ;;  %276 = vmatpush.msra.mxu0 %v263_v3 }
  0x1d   :  { %247 = vmatpush.msrb.mxu3 %v200_v0 }
  0x1f   :  { %248 = vmatpush.msrb.mxu3 %v198_v2 }
  0x21   :  { %249 = vmatpush.msrb.mxu3 %v196_v4 }
  0x86   :  { %v78_v6 = vpop.f32.mrf.mxu0 }
  0x87   :  { %v79_v7 = vadd.f32 %v952_v5, %v78_v6  ;;  %v262_v5 = vld [vmem:[%s1386_s12 + $0x30] sm:$0xff]  ;;  %v194_v6 = vld [vmem:[%s1384_s10 + $0x18] sm:$0xff] }
  0x88   :  { %277 = vmatpush.msra.mxu0 %v262_v5  ;;  %250 = vmatpush.msrb.mxu3 %v194_v6 }
  0x89   :  { %v84_v8 = vsel %vm83_vm1, %v79_v7, 0.0 }
  0x8a   :  { %85 = vadd.xlane.f32.xlu0 %v84_v8  ;;  %v192_v8 = vld [vmem:[%s1384_s10 + $0x8] sm:$0xff] }
  0x8b   :  { %251 = vmatpush.msrb.mxu3 %v192_v8  ;;  %v998_v8 = vmov 1.0  }
  0xfd   :  { %v86_v16 = vpop.xlane.xlu0 %85 }
  0xfe   :  { %v94_v17 = vmul.f32 %v1098_v15, %v86_v16 }
 0x100   :  { %v95_v18 = vsub.f32 %v79_v7, %v94_v17  ;;  %v261_v7 = vld [vmem:[%s1386_s12 + $0x28] sm:$0xff]  ;;  %v256_v17 = vld [vmem:[%s1386_s12] sm:$0xff] }
 0x101   :  { %278 = vmatpush.msra.mxu0 %v261_v7  ;;  %v957_v7 = vld [vmem:[%s1383_s9] ss:$0 sm:$0xff] }
 0x102   :  { %v96_v19 = vmul.f32 %v95_v18, %v95_v18 }
 0x103   :  { %279 = vmatpush.msra.mxu0 %v260_v9 }
 0x104   :  { %v97_v20 = vsel %vm83_vm1, %v96_v19, 0.0 }
 0x105   :  { %98 = vadd.xlane.f32.xlu0 %v97_v20  ;;  %280 = vmatpush.msra.mxu0 %v259_v10 }
 0x107   :  { %281 = vmatpush.msra.mxu0 %v258_v11 }
 0x109   :  { %282 = vmatpush.msra.mxu0 %v257_v14 }
 0x10b   :  { %283 = vmatpush.msra.mxu0 %v256_v17 }
 0x178   :  { %v99_v29 = vpop.xlane.xlu0 %98 }
 0x179   :  { %v100_v30 = vmul.f32 %v99_v29, %v1098_v15 }
 0x17b   :  { %v101_v31 = vadd.f32 1e-05, %v100_v30 }
 0x17d   :  { %961 = vrsqrt.f32 %v101_v31  ;;  %vm108_vm4 = vweird.f32 %v101_v31 }
 0x183   :  { %v962_v32 = vpop.eup %961 }
 0x184   :  { %v103_v33 = vmul.f32 %v962_v32, %v101_v31  ;;  %vm109_vm3 = vweird.f32 %v962_v32 }
 0x185   :  { %vm110_vm5 = vmor %vm108_vm4, %vm109_vm3 }
 0x186   :  { %v104_v34 = vmul.f32 %v962_v32, %v103_v33 }
 0x188   :  { %v105_v35 = vmul.f32 0.5, %v104_v34 }
 0x18a   :  { %v106_v36 = vsub.f32 1.5, %v105_v35 }
 0x18c   :  { %v107_v37 = vmul.f32 %v962_v32, %v106_v36 }
 0x18e   :  { %v111_v39 = vsel %vm110_vm5, %v962_v32, %v107_v37 }
 0x18f   :  { %v112_v40 = vmul.f32 %v111_v39, %v95_v18  ;;  %v288_v18 = vlaneseq }
 0x191   :  { %v116_v42 = vmul.f32 %v953_v38, %v112_v40  ;;  %v1217_v19 = vshrl.u32 %v288_v18, 7  ;;  %v1219_v20 = vand.u32 127, %v288_v18 }
 0x193   :  { %v120_v43 = vadd.f32 %v954_v41, %v116_v42  ;;  %v332_v22 = vadd.s32 112, %v1217_v19  ;;  %v331_v23 = vadd.s32 104, %v1217_v19  ;;  %v330_v24 = vadd.s32 96, %v1217_v19 }
 0x194   :  { %v349_v26 = vadd.s32 248, %v1217_v19  ;;  %v329_v27 = vadd.s32 88, %v1217_v19  ;;  %v348_v35 = vadd.s32 240, %v1217_v19  ;;  %v328_v10 = vadd.s32 80, %v1217_v19 }
 0x195   :  { %v121_v44 = vmax.f32 %v120_v43, 0.0  ;;  %v364_v29 = vcvt.s32.f32 %v332_v22  ;;  %v363_v30 = vcvt.s32.f32 %v331_v23  ;;  %v362_v31 = vcvt.s32.f32 %v330_v24 }
 0x196   :  { %v381_v33 = vcvt.s32.f32 %v349_v26  ;;  %v361_v34 = vcvt.s32.f32 %v329_v27  ;;  %v380_v43 = vcvt.s32.f32 %v348_v35  ;;  %v347_v11 = vadd.s32 232, %v1217_v19 }
 0x197   :  { %802 = vmatmul.msk.f32.vlgmr.msra.gmra.mxu3 %vm134_vm6, %v121_v44  ;;  %v396_v37 = vadd.f32 0.5, %v364_v29  ;;  %v395_v38 = vadd.f32 0.5, %v363_v30  ;;  %v394_v39 = vadd.f32 0.5, %v362_v31  ;;  %v326_v14 = vadd.s32 64, %v1217_v19 }
 0x198   :  { %v413_v41 = vadd.f32 0.5, %v381_v33  ;;  %v393_v42 = vadd.f32 0.5, %v361_v34  ;;  %v360_v18 = vcvt.s32.f32 %v328_v10 }
 0x199   :  { %v358_v23 = vcvt.s32.f32 %v326_v14 }
 0x19a   :  { %v392_v27 = vadd.f32 0.5, %v360_v18 }
 0x19b   :  { %v390_v31 = vadd.f32 0.5, %v358_v23 }
 0x19c   :  { %v424_v34 = vmul.f32 0.0625, %v392_v27 }
 0x21a   :  { %v155_v46 = vpop.f32.mrf.mxu3 }
 0x21b   :  { %v156_v47 = vadd.f32 %v955_v45, %v155_v46  ;;  %v428_v45 = vmul.f32 0.0625, %v396_v37  ;;  %v427_v46 = vmul.f32 0.0625, %v395_v38  ;;  %v344_v37 = vadd.s32 208, %v1217_v19 }
 0x21d   :  { %v160_v48 = vsel %vm83_vm1, %v156_v47, 0.0  ;;  %v460_v54 = vfloor.f32 %v428_v45  ;;  %v459_v55 = vfloor.f32 %v427_v46  ;;  %v376_v45 = vcvt.s32.f32 %v344_v37 }
 0x21e   :  { %161 = vadd.xlane.f32.xlu1 %v160_v48  ;;  %v321_v37 = vadd.s32 24, %v1217_v19 }
 0x21f   :  { %v910_v63 = vcvt.f32.s32 %v460_v54  ;;  %v908_v0 = vcvt.f32.s32 %v459_v55  ;;  %v408_v54 = vadd.f32 0.5, %v376_v45 }
 0x221   :  { %vm524_vm11 = vcmp.eq.s32.totalorder %v910_v63, %v1219_v20  ;;  %vm523_vm12 = vcmp.eq.s32.totalorder %v908_v0, %v1219_v20  ;;  %v343_v63 = vadd.s32 200, %v1217_v19  ;;  %v323_v0 = vadd.s32 40, %v1217_v19 }
 0x291   :  { %v162_v49 = vpop.xlane.xlu1 %161 }
 0x292   :  { %v163_v50 = vmul.f32 %v162_v49, %v1098_v15  ;;  %v445_v49 = vmul.f32 0.0625, %v413_v41 }
 0x294   :  { %v1139_v51 = vsub.f32 %v156_v47, %v163_v50  ;;  %v426_v47 = vmul.f32 0.0625, %v394_v39  ;;  %v425_v50 = vmul.f32 0.0625, %v393_v42  ;;  %v477_v58 = vfloor.f32 %v445_v49 }
 0x295   :  { %v422_v39 = vmul.f32 0.0625, %v390_v31  ;;  %v456_v42 = vfloor.f32 %v424_v34 }
 0x296   :  { %v165_v52 = vmul.f32 %v1139_v51, %v1139_v51  ;;  %v458_v56 = vfloor.f32 %v426_v47  ;;  %v457_v59 = vfloor.f32 %v425_v50  ;;  %v944_v3 = vcvt.f32.s32 %v477_v58 }
 0x297   :  { %v454_v47 = vfloor.f32 %v422_v39  ;;  %v902_v50 = vcvt.f32.s32 %v456_v42  ;;  %v353_v39 = vcvt.s32.f32 %v321_v37  ;;  %v339_v42 = vadd.s32 168, %v1217_v19 }
 0x298   :  { %v166_v53 = vsel %vm83_vm1, %v165_v52, 0.0  ;;  %v412_v52 = vadd.f32 0.5, %v380_v43  ;;  %v906_v1 = vcvt.f32.s32 %v458_v56  ;;  %v904_v4 = vcvt.f32.s32 %v457_v59 }
 0x299   :  { %167 = vadd.xlane.f32.xlu1 %v166_v53  ;;  %vm541_vm14 = vcmp.eq.s32.totalorder %v944_v3, %v1219_v20  ;;  %v898_v56 = vcvt.f32.s32 %v454_v47  ;;  %vm520_vm1 = vcmp.eq.s32.totalorder %v902_v50, %v1219_v20  ;;  %v440_v59 = vmul.f32 0.0625, %v408_v54 }
 0x29a   :  { %v444_v60 = vmul.f32 0.0625, %v412_v52  ;;  %vm522_vm13 = vcmp.eq.s32.totalorder %v906_v1, %v1219_v20  ;;  %vm521_vm15 = vcmp.eq.s32.totalorder %v904_v4, %v1219_v20  ;;  %858 = vmatpush.msk.msra.mxu2 %vm541_vm14, %v998_v8  ;;  %v342_v1 = vadd.s32 192, %v1217_v19 }
 0x29b   :  { %vm518_vm5 = vcmp.eq.s32.totalorder %v898_v56, %v1219_v20  ;;  %v341_v3 = vadd.s32 184, %v1217_v19  ;;  %v1313_v47 = vadd.s32 8, %v1217_v19  ;;  %v337_v56 = vadd.s32 152, %v1217_v19 }
 0x29c   :  { %v476_v5 = vfloor.f32 %v444_v60 }
 0x29d   :  { %v373_v10 = vcvt.s32.f32 %v341_v3  ;;  %v351_v54 = vcvt.s32.f32 %v1313_v47 }
 0x30c   :  { %v168_v12 = vpop.xlane.xlu1 %167 }
 0x30d   :  { %v169_v13 = vmul.f32 %v168_v12, %v1098_v15  ;;  %v333_v15 = vadd.s32 120, %v1217_v19  ;;  %v327_v12 = vadd.s32 72, %v1217_v19 }
 0x30f   :  { %v170_v16 = vadd.f32 1e-05, %v169_v13  ;;  %v365_v28 = vcvt.s32.f32 %v333_v15  ;;  %v346_v13 = vadd.s32 224, %v1217_v19  ;;  %v359_v15 = vcvt.s32.f32 %v327_v12 }
 0x311   :  { %963 = vrsqrt.f32 %v170_v16  ;;  %vm177_vm7 = vweird.f32 %v170_v16  ;;  %v397_v36 = vadd.f32 0.5, %v365_v28  ;;  %v378_v22 = vcvt.s32.f32 %v346_v13 }
 0x312   :  { %v391_v29 = vadd.f32 0.5, %v359_v15 }
 0x313   :  { %v429_v44 = vmul.f32 0.0625, %v397_v36  ;;  %v410_v30 = vadd.f32 0.5, %v378_v22 }
 0x314   :  { %v423_v36 = vmul.f32 0.0625, %v391_v29 }
 0x315   :  { %v461_v53 = vfloor.f32 %v429_v44  ;;  %v442_v38 = vmul.f32 0.0625, %v410_v30 }
 0x316   :  { %v455_v44 = vfloor.f32 %v423_v36 }
 0x317   :  { %v964_v21 = vpop.eup %963  ;;  %v912_v62 = vcvt.f32.s32 %v461_v53  ;;  %v474_v46 = vfloor.f32 %v442_v38  ;;  %v340_v38 = vadd.s32 176, %v1217_v19 }
 0x318   :  { %v172_v25 = vmul.f32 %v964_v21, %v170_v16  ;;  %vm178_vm8 = vweird.f32 %v964_v21  ;;  %v345_v16 = vadd.s32 216, %v1217_v19  ;;  %v900_v53 = vcvt.f32.s32 %v455_v44 }
 0x319   :  { %vm179_vm9 = vmor %vm177_vm7, %vm178_vm8  ;;  %vm525_vm10 = vcmp.eq.s32.totalorder %v912_v62, %v1219_v20  ;;  %v938_v55 = vcvt.f32.s32 %v474_v46  ;;  %v324_v62 = vadd.s32 48, %v1217_v19  ;;  %v371_v46 = vcvt.s32.f32 %v339_v42 }
 0x31a   :  { %v173_v32 = vmul.f32 %v964_v21, %v172_v25  ;;  %842 = vmatpush.msk.msra.mxu1 %vm525_vm10, %v998_v8  ;;  %v377_v24 = vcvt.s32.f32 %v345_v16  ;;  %v325_v25 = vadd.s32 56, %v1217_v19  ;;  %vm519_vm3 = vcmp.eq.s32.totalorder %v900_v53, %v1219_v20 }
 0x31b   :  { %vm538_vm4 = vcmp.eq.s32.totalorder %v938_v55, %v1219_v20  ;;  %v403_v53 = vadd.f32 0.5, %v371_v46 }
 0x31c   :  { %v174_v40 = vmul.f32 0.5, %v173_v32  ;;  %843 = vmatpush.msk.msra.mxu1 %vm524_vm11, %v998_v8  ;;  %v409_v32 = vadd.f32 0.5, %v377_v24  ;;  %v357_v33 = vcvt.s32.f32 %v325_v25 }
 0x31e   :  { %v175_v48 = vsub.f32 1.5, %v174_v40  ;;  %844 = vmatpush.msk.msra.mxu1 %vm523_vm12, %v998_v8  ;;  %v441_v40 = vmul.f32 0.0625, %v409_v32  ;;  %v389_v41 = vadd.f32 0.5, %v357_v33 }
 0x320   :  { %v176_v57 = vmul.f32 %v964_v21, %v175_v48  ;;  %845 = vmatpush.msk.msra.mxu1 %vm522_vm13, %v998_v8  ;;  %v473_v48 = vfloor.f32 %v441_v40  ;;  %v421_v49 = vmul.f32 0.0625, %v389_v41  ;;  %v372_v40 = vcvt.s32.f32 %v340_v38 }
 0x321   :  { %v320_v41 = vadd.s32 16, %v1217_v19 }
 0x322   :  { %v180_v2 = vsel %vm179_vm9, %v964_v21, %v176_v57  ;;  %v379_v21 = vcvt.s32.f32 %v347_v11  ;;  %846 = vmatpush.msk.msra.mxu1 %vm521_vm15, %v998_v8  ;;  %v936_v57 = vcvt.f32.s32 %v473_v48  ;;  %v453_v58 = vfloor.f32 %v421_v49 }
 0x323   :  { %v181_v6 = vmul.f32 %v180_v2, %v1139_v51  ;;  %v942_v51 = vcvt.f32.s32 %v476_v5  ;;  %v322_v2 = vadd.s32 32, %v1217_v19  ;;  %v356_v5 = vcvt.s32.f32 %v324_v62 }
 0x324   :  { %v411_v28 = vadd.f32 0.5, %v379_v21  ;;  %847 = vmatpush.msk.msra.mxu1 %vm520_vm1, %v998_v8  ;;  %vm537_vm7 = vcmp.eq.s32.totalorder %v936_v57, %v1219_v20  ;;  %v896_v60 = vcvt.f32.s32 %v453_v58  ;;  %v404_v44 = vadd.f32 0.5, %v372_v40 }
 0x325   :  { %v185_v9 = vmul.f32 %v956_v61, %v181_v6  ;;  %vm540_vm0 = vcmp.eq.s32.totalorder %v942_v51, %v1219_v20  ;;  %v472_v61 = vfloor.f32 %v440_v59  ;;  %v375_v6 = vcvt.s32.f32 %v343_v63 }
 0x326   :  { %859 = vmatpush.msk.msra.mxu2 %vm540_vm0, %v998_v8  ;;  %v443_v35 = vmul.f32 0.0625, %v411_v28  ;;  %848 = vmatpush.msk.msra.mxu1 %vm519_vm3, %v998_v8  ;;  %vm517_vm8 = vcmp.eq.s32.totalorder %v896_v60, %v1219_v20  ;;  %v374_v51 = vcvt.s32.f32 %v342_v1  ;;  %v388_v11 = vadd.f32 0.5, %v356_v5 }
 0x327   :  { %v189_v17 = vadd.f32 %v957_v7, %v185_v9  ;;  %v934_v4 = vcvt.f32.s32 %v472_v61  ;;  %v355_v7 = vcvt.s32.f32 %v323_v0  ;;  %v354_v9 = vcvt.s32.f32 %v322_v2 }
 0x328   :  { %v475_v43 = vfloor.f32 %v443_v35  ;;  %849 = vmatpush.msk.msra.mxu1 %vm518_vm5, %v998_v8  ;;  %v407_v12 = vadd.f32 0.5, %v375_v6  ;;  %v406_v14 = vadd.f32 0.5, %v374_v51  ;;  %v420_v18 = vmul.f32 0.0625, %v388_v11 }
 0x329   :  { %v190_v26 = vmax.f32 %v189_v17, 0.0  ;;  %v387_v13 = vadd.f32 0.5, %v355_v7  ;;  %v386_v16 = vadd.f32 0.5, %v354_v9  ;;  %v405_v17 = vadd.f32 0.5, %v373_v10 }
 0x32a   :  { %v940_v52 = vcvt.f32.s32 %v475_v43  ;;  %850 = vmatpush.msk.msra.mxu1 %vm517_vm8, %v998_v8  ;;  %v439_v21 = vmul.f32 0.0625, %v407_v12  ;;  %v438_v22 = vmul.f32 0.0625, %v406_v14  ;;  %v452_v25 = vfloor.f32 %v420_v18 }
 0x32b   :  { %803 = vmatmul.msk.f32.vlgmr.msrb.gmra.mxu0 %vm134_vm6, %v190_v26  ;;  %804 = vmatmul.msk.f32.vlgmr.msrb.gmra.mxu3 %vm134_vm6, %v190_v26  ;;  %v419_v15 = vmul.f32 0.0625, %v387_v13  ;;  %v418_v23 = vmul.f32 0.0625, %v386_v16  ;;  %v437_v24 = vmul.f32 0.0625, %v405_v17  ;;  %v385_v43 = vadd.f32 0.5, %v353_v39 }
 0x32c   :  { %vm539_vm2 = vcmp.eq.s32.totalorder %v940_v52, %v1219_v20  ;;  %v470_v28 = vfloor.f32 %v438_v22  ;;  %v894_v31 = vcvt.f32.s32 %v452_v25  ;;  %v352_v45 = vcvt.s32.f32 %v320_v41 }
 0x32d   :  { %860 = vmatpush.msk.msra.mxu2 %vm539_vm2, %v998_v8  ;;  %v451_v27 = vfloor.f32 %v419_v15  ;;  %v450_v29 = vfloor.f32 %v418_v23  ;;  %v469_v30 = vfloor.f32 %v437_v24  ;;  %v338_v48 = vadd.s32 160, %v1217_v19 }
 0x32e   :  { %v930_v34 = vcvt.f32.s32 %v470_v28  ;;  %vm516_vm9 = vcmp.eq.s32.totalorder %v894_v31, %v1219_v20  ;;  %v417_v49 = vmul.f32 0.0625, %v385_v43  ;;  %v436_v50 = vmul.f32 0.0625, %v404_v44 }
 0x32f   :  { %861 = vmatpush.msk.msra.mxu2 %vm538_vm4, %v998_v8  ;;  %v892_v33 = vcvt.f32.s32 %v451_v27  ;;  %v890_v35 = vcvt.f32.s32 %v450_v29  ;;  %v928_v36 = vcvt.f32.s32 %v469_v30  ;;  %851 = vmatpush.msk.msra.mxu1 %vm516_vm9, %v998_v8  ;;  %v384_v52 = vadd.f32 0.5, %v352_v45 }
 0x330   :  { %vm534_vm12 = vcmp.eq.s32.totalorder %v930_v34, %v1219_v20  ;;  %v370_v55 = vcvt.s32.f32 %v338_v48  ;;  %v449_v57 = vfloor.f32 %v417_v49  ;;  %v468_v58 = vfloor.f32 %v436_v50 }
 0x331   :  { %862 = vmatpush.msk.msra.mxu2 %vm537_vm7, %v998_v8  ;;  %vm515_vm11 = vcmp.eq.s32.totalorder %v892_v33, %v1219_v20  ;;  %vm514_vm13 = vcmp.eq.s32.totalorder %v890_v35, %v1219_v20  ;;  %vm533_vm14 = vcmp.eq.s32.totalorder %v928_v36, %v1219_v20  ;;  %v416_v59 = vmul.f32 0.0625, %v384_v52 }
 0x332   :  { %852 = vmatpush.msk.msra.mxu1 %vm515_vm11, %v998_v8  ;;  %v435_v60 = vmul.f32 0.0625, %v403_v53  ;;  %v383_v61 = vadd.f32 0.5, %v351_v54  ;;  %v402_v62 = vadd.f32 0.5, %v370_v55  ;;  %v350_v63 = vcvt.s32.f32 %v1217_v19  ;;  %v207_v55 = vld [vmem:[%s1385_s11] sm:$0x3] }
 0x333   :  { %805 = vmatmul.msk.f32.vlgmr.msra.gmra.mxu0 %vm134_vm6, %v190_v26  ;;  %vm536_vm6 = vcmp.eq.s32.totalorder %v934_v4, %v1219_v20  ;;  %v471_v26 = vfloor.f32 %v439_v21  ;;  %v369_v0 = vcvt.s32.f32 %v337_v56  ;;  %v888_v1 = vcvt.f32.s32 %v449_v57 }
 0x334   :  { %863 = vmatpush.msk.msra.mxu2 %vm536_vm6, %v998_v8  ;;  %853 = vmatpush.msk.msra.mxu1 %vm514_vm13, %v998_v8  ;;  %v926_v2 = vcvt.f32.s32 %v468_v58  ;;  %v448_v3 = vfloor.f32 %v416_v59  ;;  %v467_v4 = vfloor.f32 %v435_v60  ;;  %v415_v5 = vmul.f32 0.0625, %v383_v61 }
 0x335   :  { %v932_v32 = vcvt.f32.s32 %v471_v26  ;;  %v434_v6 = vmul.f32 0.0625, %v402_v62  ;;  %v382_v7 = vadd.f32 0.5, %v350_v63  ;;  %v401_v51 = vadd.f32 0.5, %v369_v0 }
 0x336   :  { %vm513_vm15 = vcmp.eq.s32.totalorder %v888_v1, %v1219_v20  ;;  %vm532_vm0 = vcmp.eq.s32.totalorder %v926_v2, %v1219_v20  ;;  %v886_v9 = vcvt.f32.s32 %v448_v3  ;;  %v924_v10 = vcvt.f32.s32 %v467_v4 }
 0x337   :  { %vm535_vm10 = vcmp.eq.s32.totalorder %v932_v32, %v1219_v20  ;;  %854 = vmatpush.msk.msra.mxu1 %vm513_vm15, %v998_v8  ;;  %v447_v11 = vfloor.f32 %v415_v5  ;;  %v466_v12 = vfloor.f32 %v434_v6  ;;  %v414_v13 = vmul.f32 0.0625, %v382_v7 }
 0x338   :  { %864 = vmatpush.msk.msra.mxu2 %vm535_vm10, %v998_v8  ;;  %v433_v14 = vmul.f32 0.0625, %v401_v51  ;;  %vm512_vm1 = vcmp.eq.s32.totalorder %v886_v9, %v1219_v20  ;;  %vm531_vm2 = vcmp.eq.s32.totalorder %v924_v10, %v1219_v20  ;;  %v336_v16 = vadd.s32 144, %v1217_v19 }
 0x339   :  { %855 = vmatpush.msk.msra.mxu1 %vm512_vm1, %v998_v8  ;;  %v884_v17 = vcvt.f32.s32 %v447_v11  ;;  %v922_v18 = vcvt.f32.s32 %v466_v12  ;;  %v446_v21 = vfloor.f32 %v414_v13  ;;  %v294_v22 = vcvt.s32.f32 %v1219_v20 }
 0x33a   :  { %865 = vmatpush.msk.msra.mxu2 %vm534_vm12, %v998_v8  ;;  %v465_v15 = vfloor.f32 %v433_v14  ;;  %v368_v23 = vcvt.s32.f32 %v336_v16  ;;  %v335_v27 = vadd.s32 136, %v1217_v19  ;;  %v334_v28 = vadd.s32 128, %v1217_v19 }
 0x33b   :  { %vm511_vm3 = vcmp.eq.s32.totalorder %v884_v17, %v1219_v20  ;;  %vm530_vm4 = vcmp.eq.s32.totalorder %v922_v18, %v1219_v20  ;;  %v882_v24 = vcvt.f32.s32 %v446_v21  ;;  %v290_v29 = vadd.s32 128, %v1219_v20 }
 0x33c   :  { %866 = vmatpush.msk.msra.mxu2 %vm533_vm14, %v998_v8  ;;  %v920_v25 = vcvt.f32.s32 %v465_v15  ;;  %856 = vmatpush.msk.msra.mxu1 %vm511_vm3, %v998_v8  ;;  %v400_v26 = vadd.f32 0.5, %v368_v23  ;;  %v296_v30 = vadd.f32 0.5, %v294_v22  ;;  %v367_v32 = vcvt.s32.f32 %v335_v27  ;;  %v676_v22 = vld [vmem:[%s1375_s1] sm:$0xff] }
 0x33d   :  { %vm510_vm5 = vcmp.eq.s32.totalorder %v882_v24, %v1219_v20  ;;  %v366_v33 = vcvt.s32.f32 %v334_v28  ;;  %v295_v37 = vcvt.s32.f32 %v290_v29  ;;  %v209_v57 = vperm.slane %v207_v55, 0 }
 0x33e   :  { %867 = vmatpush.msk.msra.mxu2 %vm532_vm0, %v998_v8  ;;  %vm529_vm7 = vcmp.eq.s32.totalorder %v920_v25, %v1219_v20  ;;  %857 = vmatpush.msk.msra.mxu1 %vm510_vm5, %v998_v8  ;;  %v432_v31 = vmul.f32 0.0625, %v400_v26  ;;  %v399_v35 = vadd.f32 0.5, %v367_v32  ;;  %v298_v38 = vmul.f32 0.0625, %v296_v30  ;;  %v958_v30 = vld [vmem:[%s1387_s13] ss:$0 sm:$0xff] }
 0x33f   :  { %v398_v36 = vadd.f32 0.5, %v366_v33  ;;  %v297_v44 = vadd.f32 0.5, %v295_v37  ;;  %v999_v62 = vmov 0.0   ;;  %vm678_vm14 = vcmask 130048  }
 0x340   :  { %868 = vmatpush.msk.msra.mxu2 %vm531_vm2, %v998_v8  ;;  %v464_v34 = vfloor.f32 %v432_v31  ;;  %v431_v40 = vmul.f32 0.0625, %v399_v35  ;;  %v300_v45 = vfloor.f32 %v298_v38 }
 0x341   :  { %v430_v41 = vmul.f32 0.0625, %v398_v36  ;;  %v299_v49 = vmul.f32 0.0625, %v297_v44 }
 0x342   :  { %869 = vmatpush.msk.msra.mxu2 %vm530_vm4, %v998_v8  ;;  %v918_v39 = vcvt.f32.s32 %v464_v34  ;;  %v463_v42 = vfloor.f32 %v431_v40  ;;  %v878_v50 = vcvt.f32.s32 %v300_v45 }
 0x343   :  { %v462_v43 = vfloor.f32 %v430_v41  ;;  %v301_v52 = vfloor.f32 %v299_v49  ;;  %v1000_v41 = vmov 16.0  }
 0x344   :  { %870 = vmatpush.msk.msra.mxu2 %vm529_vm7, %v998_v8  ;;  %vm528_vm8 = vcmp.eq.s32.totalorder %v918_v39, %v1219_v20  ;;  %v916_v46 = vcvt.f32.s32 %v463_v42  ;;  %v304_v53 = vmul.u32 16, %v878_v50  ;;  %965 = vrcp.f32 %v1000_v41 }
 0x345   :  { %v914_v48 = vcvt.f32.s32 %v462_v43  ;;  %v880_v54 = vcvt.f32.s32 %v301_v52 }
 0x346   :  { %871 = vmatpush.msk.msra.mxu2 %vm528_vm8, %v998_v8  ;;  %vm527_vm6 = vcmp.eq.s32.totalorder %v916_v46, %v1219_v20  ;;  %v306_v56 = vsub.s32 %v1219_v20, %v304_v53 }
 0x347   :  { %vm526_vm9 = vcmp.eq.s32.totalorder %v914_v48, %v1219_v20  ;;  %v305_v58 = vmul.u32 16, %v880_v54 }
 0x348   :  { %872 = vmatpush.msk.msra.mxu2 %vm527_vm6, %v998_v8  ;;  %vm308_vm10 = vcmp.eq.s32.totalorder %v306_v56, %v1217_v19  ;;  %vm310_vm12 = vcmp.eq.s32.totalorder %v306_v56, %v1313_v47 }
 0x349   :  { %v307_v61 = vsub.s32 %v290_v29, %v305_v58  ;;  %v806_v63 = vsel %vm308_vm10, 1.0, %v999_v62  ;;  %v808_v5 = vsel %vm310_vm12, 1.0, %v999_v62  ;;  %v875_v29 = vld [vmem:[%s1375_s1 + $0x8] sm:$0xff]  ;;  %s1001_s1 = smov [#allocation2]  }
 0x34a   :  { %873 = vmatpush.msk.msra.mxu2 %vm526_vm9, %v998_v8  ;;  %v210_v8 = vperm.slane %v207_v55, 1  ;;  %v966_v42 = vpop.eup %965  ;;  %s787_s13 = sshll.u32 %s1001_s1, 4  ;;  %s788_s13 = int_to_ptr.vmem [resolvable:$true] %s787_s13 }
 0x34b   :  { %vm309_vm11 = vcmp.eq.s32.totalorder %v307_v61, %v1217_v19  ;;  %vm311_vm13 = vcmp.eq.s32.totalorder %v307_v61, %v1313_v47  ;;  %v735_v43 = vmul.f32 16.0, %v966_v42  ;;  %vm739_vm15 = vweird.f32 %v966_v42 }
 0x34c   :  { %v807_v20 = vsel %vm309_vm11, 1.0, %v999_v62  ;;  %v809_v51 = vsel %vm311_vm13, 1.0, %v999_v62 }
 0x34d   :  { %v736_v44 = vsub.f32 1.0, %v735_v43 }
 0x34f   :  { %v737_v45 = vmul.f32 %v966_v42, %v736_v44 }
 0x351   :  { %v738_v46 = vadd.f32 %v966_v42, %v737_v45 }
 0x353   :  { %v740_v48 = vsel %vm739_vm15, %v966_v42, %v738_v46 }
 0x3a8   :  { %v233_v59 = vpop.f32.mrf.mxu0 }
 0x3a9   :  { %v234_v60 = vadd.f32 %v233_v59, %v209_v57 }
 0x3ab   :  { %v606_v0 = vperm.slane %v234_v60, 0  ;;  %v612_v9 = vperm.slane %v234_v60, 1 }
 0x3ad   :  { %v608_v1 = vmul.f32 %v806_v63, %v606_v0  ;;  %v610_v7 = vmul.f32 %v808_v5, %v606_v0  ;;  %v614_v11 = vmul.f32 %v806_v63, %v612_v9  ;;  %v616_v13 = vmul.f32 %v808_v5, %v612_v9 }
 0x3ae   :  { %v253_v2 = vpop.f32.mrf.mxu3 }
 0x3af   :  { %v254_v3 = vadd.f32 %v253_v2, %v210_v8  ;;  %634 = vmatmul.f32.vlgmr.msra.gmra.mxu1 %v608_v1 }
 0x3b0   :  { %v285_v31 = vpop.f32.mrf.mxu0 }
 0x3b1   :  { %v607_v4 = vperm.slane %v254_v3, 0  ;;  %v613_v19 = vperm.slane %v254_v3, 1  ;;  %v286_v32 = vadd.f32 %v958_v30, %v285_v31 }
 0x3b3   :  { %v609_v6 = vmul.f32 %v807_v20, %v607_v4  ;;  %v611_v10 = vmul.f32 %v809_v51, %v607_v4  ;;  %v615_v12 = vmul.f32 %v807_v20, %v613_v19  ;;  %v617_v14 = vmul.f32 %v809_v51, %v613_v19 }
 0x3b4   :  { %v677_v33 = vperm.slane %v286_v32, 0  ;;  %v704_v37 = vperm.slane %v286_v32, 1 }
 0x3b5   :  { %663 = vmatmul.f32.vlgmr.msra.gmra.mxu2 %v609_v6 }
 0x3b7   :  { %637 = vmatmul.f32.gmra.mxu1 %v610_v7 }
 0x3bd   :  { %666 = vmatmul.f32.gmra.mxu2 %v611_v10 }
 0x3bf   :  { %640 = vmatmul.f32.gmra.mxu1 %v614_v11 }
 0x3c5   :  { %669 = vmatmul.f32.gmra.mxu2 %v615_v12 }
 0x3c7   :  { %643 = vmatmul.f32.gmra.mxu1 %v616_v13 }
 0x3cd   :  { %672 = vmatmul.f32.gmra.mxu2 %v617_v14 }
 0x42c   :  { %v635_v16 = vpop.f32.mrf.mxu1 }
 0x434   :  { %v638_v18 = vpop.f32.mrf.mxu1 }
 0x438   :  { %v664_v17 = vpop.f32.mrf.mxu2 }
 0x439   :  { %v665_v47 = vadd.f32 %v664_v17, %v635_v16 }
 0x43c   :  { %v641_v23 = vpop.f32.mrf.mxu1 }
 0x440   :  { %v667_v21 = vpop.f32.mrf.mxu2 }
 0x441   :  { %v668_v15 = vadd.f32 %v667_v21, %v638_v18 }
 0x443   :  { %696 = vmatpush.msra.mxu3 %v668_v15 }
 0x444   :  { %v644_v25 = vpop.f32.mrf.mxu1 }
 0x445   :  { %697 = vmatpush.msra.mxu3 %v665_v47 }
 0x446   :  { %874 = vmatmul.msk.f32.vlgmr.msra.gmra.mxu3 %vm678_vm14, %v676_v22 }
 0x448   :  { %v670_v24 = vpop.f32.mrf.mxu2 }
 0x449   :  { %v671_v28 = vadd.f32 %v670_v24, %v641_v23 }
 0x450   :  { %v673_v26 = vpop.f32.mrf.mxu2 }
 0x451   :  { %v674_v27 = vadd.f32 %v673_v26, %v644_v25 }
 0x453   :  { %722 = vmatpush.msrb.mxu0 %v674_v27 }
 0x455   :  { %723 = vmatpush.msrb.mxu0 %v671_v28 }
 0x456   :  { %876 = vmatmul.msk.f32.vlgmr.msrb.gmra.mxu0 %vm678_vm14, %v875_v29 }
 0x4c9   :  { %v699_v34 = vpop.f32.mrf.mxu3 }
 0x4ca   :  { %v700_v35 = vadd.f32 %v699_v34, %v677_v33 }
 0x4cc   :  { %v728_v36 = vsel %vm678_vm14, %v700_v35, 0.0 }
 0x4cd   :  { %729 = vadd.xlane.f32.xlu2 %v728_v36 }
 0x4d3   :  { %v725_v38 = vpop.f32.mrf.mxu0 }
 0x4d4   :  { %v726_v39 = vadd.f32 %v725_v38, %v704_v37 }
 0x4d6   :  { %v731_v40 = vsel %vm678_vm14, %v726_v39, 0.0 }
 0x4d7   :  { %732 = vadd.xlane.f32.xlu2 %v731_v40 }
 0x540   :  { %v730_v49 = vpop.xlane.xlu2 %729 }
 0x541   :  { %v741_v50 = vmul.f32 %v740_v48, %v730_v49 }
 0x543   :  { %v743_v52 = vsub.f32 %v700_v35, %v741_v50 }
 0x545   :  { %v745_v53 = vmul.f32 %v743_v52, %v743_v52 }
 0x547   :  { %v747_v54 = vsel %vm678_vm14, %v745_v53, 0.0 }
 0x548   :  { %748 = vadd.xlane.f32.xlu0 %v747_v54 }
 0x54a   :  { %v733_v55 = vpop.xlane.xlu2 %732 }
 0x54b   :  { %v742_v56 = vmul.f32 %v740_v48, %v733_v55 }
 0x54d   :  { %v744_v57 = vsub.f32 %v726_v39, %v742_v56 }
 0x54f   :  { %v746_v58 = vmul.f32 %v744_v57, %v744_v57 }
 0x551   :  { %v750_v59 = vsel %vm678_vm14, %v746_v58, 0.0 }
 0x552   :  { %751 = vadd.xlane.f32.xlu1 %v750_v59 }
 0x5bb   :  { %v749_v60 = vpop.xlane.xlu0 %748 }
 0x5bc   :  { %v753_v61 = vmul.f32 %v749_v60, %v740_v48 }
 0x5be   :  { %v755_v62 = vadd.f32 1e-05, %v753_v61 }
 0x5c0   :  { %967 = vrsqrt.f32 %v755_v62  ;;  %vm763_vm1 = vweird.f32 %v755_v62 }
 0x5c5   :  { %v752_v63 = vpop.xlane.xlu1 %751 }
 0x5c6   :  { %v968_v0 = vpop.eup %967  ;;  %v754_v8 = vmul.f32 %v752_v63, %v740_v48 }
 0x5c7   :  { %v758_v1 = vmul.f32 %v968_v0, %v755_v62  ;;  %vm764_vm0 = vweird.f32 %v968_v0 }
 0x5c8   :  { %v756_v2 = vadd.f32 1e-05, %v754_v8  ;;  %vm765_vm2 = vmor %vm763_vm1, %vm764_vm0 }
 0x5c9   :  { %v759_v3 = vmul.f32 %v968_v0, %v758_v1 }
 0x5ca   :  { %969 = vrsqrt.f32 %v756_v2  ;;  %vm773_vm4 = vweird.f32 %v756_v2 }
 0x5cb   :  { %v760_v20 = vmul.f32 0.5, %v759_v3 }
 0x5cd   :  { %v761_v4 = vsub.f32 1.5, %v760_v20 }
 0x5cf   :  { %v762_v5 = vmul.f32 %v968_v0, %v761_v4 }
 0x5d0   :  { %v970_v6 = vpop.eup %969 }
 0x5d1   :  { %v766_v7 = vsel %vm765_vm2, %v968_v0, %v762_v5  ;;  %v768_v51 = vmul.f32 %v970_v6, %v756_v2  ;;  %vm774_vm3 = vweird.f32 %v970_v6 }
 0x5d2   :  { %v777_v9 = vmul.f32 %v766_v7, %v743_v52  ;;  %vm775_vm5 = vmor %vm773_vm4, %vm774_vm3 }
 0x5d3   :  { %v769_v10 = vmul.f32 %v970_v6, %v768_v51 }
 0x5d4   :  { %v779_v11 = vmax.f32 %v777_v9, 0.0 }
 0x5d5   :  { %v770_v19 = vmul.f32 0.5, %v769_v10 }
 0x5d6   :  { %781 = vst.msk [vmem:[#allocation2] sm:$0xff] %vm678_vm14, %v779_v11 }
 0x5d7   :  { %v771_v12 = vsub.f32 1.5, %v770_v19 }
 0x5d9   :  { %v772_v13 = vmul.f32 %v970_v6, %v771_v12 }
 0x5db   :  { %v776_v14 = vsel %vm775_vm5, %v970_v6, %v772_v13 }
 0x5dc   :  { %v778_v16 = vmul.f32 %v776_v14, %v744_v57 }
 0x5de   :  { %v780_v17 = vmax.f32 %v778_v16, 0.0 }
 0x5e0   :  { %782 = vst.msk [vmem:[#allocation2 + $0x8] sm:$0xff] %vm678_vm14, %v780_v17 }
 0x5e1   :  { %795 = dma.vmem_to_hbm [thread:$0]  %s788_s13, 256, %s790_s16, [#allocation3], %s1002_s17, %s1002_s17, %s1003_s18  }
 0x5e2   :  { %995 = dma.done.wait [#allocation3], 256  }
 0x5e3   :  { %996 = vsyncadd [#allocation3], 4294967040 }
 0x5e4   :  { %800 = vsyncpa [#allocation3], 1 }

</bundles_post_ra>
